<compile_context>
chip_gen: v7x
topology: tpu7x:2x2x1
jax: 0.10.0
libtpu: 0.0.40
codegen_flags: <defaults>
</compile_context>

<pallas_src>
import math

import jax
import jax.numpy as jnp
from jax.experimental import pallas as pl
from jax.experimental.pallas import tpu as pltpu

# ----------------------------- configuration -----------------------------
B = 2                       # batch
H = W = 16                  # frame spatial size
PATCH = 4                   # encoder patch size
HP, WP = H // PATCH, W // PATCH
PP = PATCH * PATCH          # 16
T_ENC = 1                   # time dim of a single step's frame
C_ENC = 8                   # encoder channels
D_MODEL = 32                # attention hidden size
N_STEPS = 3                 # rollout length (= traj.shape[1])
S_TOK = T_ENC * HP * WP     # tokens produced per step (16)
D_IN = C_ENC + 3            # token dim (pos-enc concat)
D_OUT = C_ENC + 3           # model output dim (forward slices the last C_ENC)


# ------------------------- fused rollout kernel ---------------------------
def _rollout_kernel(init_ref, w_qkv_ref, b_qkv_ref, w_od_ref, b_od_ref,
                    out_ref, k_cache, v_cache):
    """Full autoregressive rollout for ONE batch element (one grid point).

    init_ref  : (S, PP)        initial frame in patch layout
    w_qkv_ref : (PP, 3D)       folded encoder -> Q|K|V weight
    b_qkv_ref : (S, 3D)        folded per-token bias (pos-enc included)
    w_od_ref  : (D, PP)        folded out-proj[..., -C:] -> decoder weight
    b_od_ref  : (1, PP)        folded bias
    out_ref   : (n_steps, 1, S, PP)
    k_cache / v_cache : (s_max, D) VMEM scratch, persistent across the loop
    """
    n_steps = out_ref.shape[0]
    S = out_ref.shape[2]
    PPk = out_ref.shape[3]
    s_max, D = k_cache.shape

    # clear_kv_cache(): fresh cache for this batch element; the unwritten tail
    # participates (masked) in the score matmul, so it must be finite.
    k_cache[...] = jnp.zeros_like(k_cache)
    v_cache[...] = jnp.zeros_like(v_cache)

    # Hoisted loop invariants (weights, broadcast bias, causal-mask index grid).
    w_qkv = w_qkv_ref[...]
    b_qkv = b_qkv_ref[...]
    w_od = w_od_ref[...]
    b_od = jnp.broadcast_to(b_od_ref[...], (S, PPk))
    scale = 1.0 / math.sqrt(D)
    col = jax.lax.broadcasted_iota(jnp.int32, (S, s_max), 1)
    row = jax.lax.broadcasted_iota(jnp.int32, (S, s_max), 0)
    col_minus_row = col - row            # mask each step: col_minus_row <= L

    def step_fn(step, frame):
        L = step * S                     # cache write offset (const after unroll)

        # fused encoder -> Q|K|V projection (all biases + pos-enc pre-folded)
        qkv = jnp.dot(frame, w_qkv, preferred_element_type=jnp.float32) + b_qkv
        q = qkv[:, 0:D]
        k = qkv[:, D:2 * D]
        v = qkv[:, 2 * D:3 * D]

        # append-only KV-cache update (VMEM resident, persists across steps)
        k_cache[pl.ds(L, S), :] = k
        v_cache[pl.ds(L, S), :] = v

        # causal attention against the whole cache (unwritten tail masked)
        sc = jax.lax.dot_general(q, k_cache[...], (((1,), (1,)), ((), ())),
                                 preferred_element_type=jnp.float32) * scale
        sc = jnp.where(col_minus_row <= L, sc, -1e30)
        m = jnp.max(sc, axis=-1, keepdims=True)
        p = jnp.exp(sc - m)
        p = p * pl.reciprocal(jnp.sum(p, axis=-1, keepdims=True), approx=True)
        attn = jnp.dot(p, v_cache[...], preferred_element_type=jnp.float32)

        # fused out-projection[..., -C:] -> decoder linear => next frame (patch layout)
        nf = jnp.dot(attn, w_od, preferred_element_type=jnp.float32) + b_od

        out_ref[step, 0] = nf
        return nf                        # carried into the next step's encoder

    jax.lax.fori_loop(0, n_steps, step_fn, init_ref[...], unroll=True)


# ----------------------------- pipeline glue -----------------------------
def make_positional_encoding(T, Hh, Ww):
    t = jnp.linspace(0.0, 1.0, T)
    r = jnp.linspace(0.0, 1.0, Hh)
    c = jnp.linspace(0.0, 1.0, Ww)
    time_enc = jnp.broadcast_to(t[:, None, None], (T, Hh, Ww))
    row_enc = jnp.broadcast_to(r[None, :, None], (T, Hh, Ww))
    col_enc = jnp.broadcast_to(c[None, None, :], (T, Hh, Ww))
    return jnp.stack([time_enc, row_enc, col_enc], axis=-1)


def causal_ms_pipeline(params, init_cond, traj):
    """Pallas forward: one pallas_call for the full autoregressive rollout."""
    n_steps = traj.shape[1]
    Bb, Hh, Ww = init_cond.shape
    s_max = n_steps * S_TOK

    # ---- layout / exact weight folding (pure-JAX plumbing, outside kernel) ----
    # patchify the initial frame: (B, H, W) -> (B*S_TOK, P*P), b-major token order
    init_p = init_cond.reshape(Bb, HP, PATCH, WP, PATCH)
    init_p = init_p.transpose(0, 1, 3, 2, 4).reshape(Bb * S_TOK, PP)

    wqkv = jnp.concatenate([params["wq"], params["wk"], params["wv"]], axis=1)
    bqkv = jnp.concatenate([params["bq"], params["bk"], params["bv"]], axis=1)
    pos = make_positional_encoding(T_ENC, HP, WP).reshape(S_TOK, 3)

    # encoder -> QKV chain folded (no nonlinearity between them -> exact)
    w_qkv_fold = params["w_enc"] @ wqkv[3:, :]                            # (PP, 3D)
    b_qkv_fold = pos @ wqkv[:3, :] + params["b_enc"] @ wqkv[3:, :] + bqkv  # (S, 3D)
    # out-proj[..., -C:] -> decoder chain folded
    wo_c = params["wo"][:, -C_ENC:]
    bo_c = params["bo"][:, -C_ENC:]
    w_od_fold = wo_c @ params["w_dec"]                                     # (D, PP)
    b_od_fold = bo_c @ params["w_dec"] + params["b_dec"]                   # (1, PP)

    pred_p = pl.pallas_call(
        _rollout_kernel,
        out_shape=jax.ShapeDtypeStruct((n_steps, Bb, S_TOK, PP), jnp.float32),
        grid=(Bb,),
        in_specs=[
            pl.BlockSpec((S_TOK, PP), lambda b: (b, 0)),                  # init patch rows for batch b
            pl.BlockSpec((PP, 3 * D_MODEL), lambda b: (0, 0)),            # folded W_qkv
            pl.BlockSpec((S_TOK, 3 * D_MODEL), lambda b: (0, 0)),         # folded b_qkv
            pl.BlockSpec((D_MODEL, PP), lambda b: (0, 0)),                # folded W_od
            pl.BlockSpec((1, PP), lambda b: (0, 0)),                      # folded b_od
        ],
        out_specs=pl.BlockSpec((n_steps, 1, S_TOK, PP), lambda b: (0, b, 0, 0)),
        scratch_shapes=[
            pltpu.VMEM((s_max, D_MODEL), jnp.float32),                    # K cache (per batch)
            pltpu.VMEM((s_max, D_MODEL), jnp.float32),                    # V cache (per batch)
        ],
        compiler_params=pltpu.CompilerParams(
            dimension_semantics=("parallel",)),   # batch elems fully independent
    )(init_p, w_qkv_fold, b_qkv_fold, w_od_fold, b_od_fold)

    # un-patchify: (n_steps, B, HP*WP, P*P) -> (B, n_steps, H, W)
    pred = pred_p.reshape(n_steps, Bb, HP, WP, PATCH, PATCH)
    pred = pred.transpose(1, 0, 2, 4, 3, 5).reshape(Bb, n_steps, Hh, Ww)
    return pred


# ---------------------- pure-JAX reference pipeline ----------------------
def _encoder_ref(params, last_frame):
    Bb, t = last_frame.shape[0], last_frame.shape[1]
    p = last_frame.reshape(Bb, t, HP, PATCH, WP, PATCH).transpose(0, 1, 2, 4, 3, 5)
    p = p.reshape(Bb * t * HP * WP, PP)
    enc = p @ params["w_enc"] + params["b_enc"]
    return enc.reshape(Bb, t, HP, WP, C_ENC)


def _decoder_ref(params, dec_in, frame_shape):
    Bb, t, _ = dec_in.shape
    x = dec_in.reshape(Bb, t, HP, WP, C_ENC)
    patches = x @ params["w_dec"] + params["b_dec"]        # (B,t,HP,WP,P*P)
    patches = patches.reshape(Bb, t, HP, WP, PATCH, PATCH).transpose(0, 1, 2, 4, 3, 5)
    return patches.reshape(frame_shape)


def _model_ref(params, tokens, kcache, vcache, cache_len):
    q = tokens @ params["wq"] + params["bq"]
    k = tokens @ params["wk"] + params["bk"]
    v = tokens @ params["wv"] + params["bv"]
    kcache = jax.lax.dynamic_update_slice(kcache, k, (0, cache_len, 0))
    vcache = jax.lax.dynamic_update_slice(vcache, v, (0, cache_len, 0))
    S = tokens.shape[1]
    Smax, D = kcache.shape[1], kcache.shape[2]
    s = jnp.einsum("bsd,btd->bst", q, kcache) / math.sqrt(D)
    col = jnp.arange(Smax)[None, :]
    row = jnp.arange(S)[:, None]
    mask = col <= (row + cache_len)
    s = jnp.where(mask[None], s, -1e30)
    p = jax.nn.softmax(s, axis=-1)
    attn = jnp.einsum("bst,btd->bsd", p, vcache)
    out = attn @ params["wo"] + params["bo"]
    return out, kcache, vcache


def _step_ref(params, last_frame, kcache, vcache, cache_len):
    enc_out = _encoder_ref(params, last_frame)
    Bb, t, Hp, Wp, C = enc_out.shape
    pos = make_positional_encoding(t, Hp, Wp)
    pos = jnp.broadcast_to(pos[None], (Bb, t, Hp, Wp, 3))
    tokens = jnp.concatenate([pos, enc_out], axis=-1).reshape(Bb, t * Hp * Wp, C + 3)
    model_out, kcache, vcache = _model_ref(params, tokens, kcache, vcache, cache_len)
    preds_enc = model_out[..., -C:]
    preds_spatial = preds_enc.reshape(Bb, t, Hp, Wp, C)
    dec_in = preds_spatial.reshape(Bb, t, Hp * Wp * C)
    next_frame = _decoder_ref(params, dec_in, last_frame.shape)
    return next_frame, kcache, vcache


def causal_ms_pipeline_ref(params, init_cond, traj):
    n_steps = traj.shape[1]
    Bb = init_cond.shape[0]
    s_max = n_steps * S_TOK
    kcache = jnp.zeros((Bb, s_max, D_MODEL), jnp.float32)   # clear_kv_cache()
    vcache = jnp.zeros((Bb, s_max, D_MODEL), jnp.float32)
    frames = [init_cond[:, None]]
    for i in range(n_steps):
        nf, kcache, vcache = _step_ref(params, frames[-1], kcache, vcache, i * S_TOK)
        frames.append(nf)
    return jnp.concatenate(frames[1:], axis=1)


# ----------------------------- parameter init -----------------------------
def init_params(key):
    ks = jax.random.split(key, 12)

    def wmat(k, shape, fan_in):
        return jax.random.normal(k, shape, jnp.float32) / math.sqrt(fan_in)

    return {
        "w_enc": wmat(ks[0], (PP, C_ENC), PP),
        "b_enc": 0.1 * jax.random.normal(ks[1], (1, C_ENC), jnp.float32),
        "wq": wmat(ks[2], (D_IN, D_MODEL), D_IN),
        "wk": wmat(ks[3], (D_IN, D_MODEL), D_IN),
        "wv": wmat(ks[4], (D_IN, D_MODEL), D_IN),
        "bq": 0.1 * jax.random.normal(ks[5], (1, D_MODEL), jnp.float32),
        "bk": 0.1 * jax.random.normal(ks[6], (1, D_MODEL), jnp.float32),
        "bv": 0.1 * jax.random.normal(ks[7], (1, D_MODEL), jnp.float32),
        "wo": wmat(ks[8], (D_MODEL, D_OUT), D_MODEL),
        "bo": 0.1 * jax.random.normal(ks[9], (1, D_OUT), jnp.float32),
        "w_dec": wmat(ks[10], (C_ENC, PP), C_ENC),
        "b_dec": 0.1 * jax.random.normal(ks[11], (1, PP), jnp.float32),
    }


# ----------------------------------- main -----------------------------------
if __name__ == "__main__":
    key = jax.random.PRNGKey(0)
    k_init, k_traj, k_par = jax.random.split(key, 3)
    init_cond = jax.random.normal(k_init, (B, H, W), jnp.float32)
    traj = jax.random.normal(k_traj, (B, N_STEPS, H, W), jnp.float32)
    params = init_params(k_par)

    pred = jax.jit(causal_ms_pipeline)(params, init_cond, traj)
    pred = jax.block_until_ready(pred)
    assert pred.shape == (B, N_STEPS, H, W), pred.shape

    ref = causal_ms_pipeline_ref(params, init_cond, traj)
    err = float(jnp.max(jnp.abs(pred - ref)))
    # tolerance covers the EUP approx-reciprocal in the in-kernel softmax
    assert err < 1e-2, f"Pallas vs reference mismatch: max abs err = {err}"

    print("KERNEL_OK")
</pallas_src>

<mosaic_0001>
module attributes {stable_mosaic.version = 11 : i64} {
  func.func @_rollout_kernel(%arg0: i32, %arg1: memref<16x16xf32, #tpu.memory_space<vmem>>, %arg2: memref<16x96xf32, #tpu.memory_space<vmem>>, %arg3: memref<16x96xf32, #tpu.memory_space<vmem>>, %arg4: memref<32x16xf32, #tpu.memory_space<vmem>>, %arg5: memref<1x16xf32, #tpu.memory_space<vmem>>, %arg6: memref<3x1x16x16xf32, #tpu.memory_space<vmem>>, %arg7: memref<48x32xf32, #tpu.memory_space<vmem>>, %arg8: memref<48x32xf32, #tpu.memory_space<vmem>>) attributes {dimension_semantics = [#tpu.dimension_semantics<parallel>], iteration_bounds = array<i64: 2>, scalar_prefetch = 0 : i64, scratch_operands = 2 : i64, tpu.core_type = #tpu.core_type<tc>, window_params = [{transform_indices = @transform_0, window_bounds = array<i64: 16, 16>}, {pipeline_mode = #tpu.pipeline_mode<synchronous>, transform_indices = @transform_1, window_bounds = array<i64: 16, 96>}, {pipeline_mode = #tpu.pipeline_mode<synchronous>, transform_indices = @transform_2, window_bounds = array<i64: 16, 96>}, {pipeline_mode = #tpu.pipeline_mode<synchronous>, transform_indices = @transform_3, window_bounds = array<i64: 32, 16>}, {pipeline_mode = #tpu.pipeline_mode<synchronous>, transform_indices = @transform_4, window_bounds = array<i64: 1, 16>}, {transform_indices = @transform_5, window_bounds = array<i64: 3, 1, 16, 16>}]} {
    %cst = arith.constant 0.000000e+00 : f32
    %0 = vector.broadcast %cst : f32 to vector<48x32xf32>
    %c0 = arith.constant 0 : index
    %c0_0 = arith.constant 0 : index
    %1 = vector.load %arg7[%c0, %c0_0] : memref<48x32xf32, #tpu.memory_space<vmem>>, vector<48x32xf32>
    tpu.vector_store %arg7[%c0, %c0_0], %0 {strides = array<i32>} : memref<48x32xf32, #tpu.memory_space<vmem>>, vector<48x32xf32>,
    %cst_1 = arith.constant 0.000000e+00 : f32
    %2 = vector.broadcast %cst_1 : f32 to vector<48x32xf32>
    %c0_2 = arith.constant 0 : index
    %c0_3 = arith.constant 0 : index
    %3 = vector.load %arg8[%c0_2, %c0_3] : memref<48x32xf32, #tpu.memory_space<vmem>>, vector<48x32xf32>
    tpu.vector_store %arg8[%c0_2, %c0_3], %2 {strides = array<i32>} : memref<48x32xf32, #tpu.memory_space<vmem>>, vector<48x32xf32>,
    %c0_4 = arith.constant 0 : index
    %c0_5 = arith.constant 0 : index
    %4 = vector.load %arg2[%c0_4, %c0_5] : memref<16x96xf32, #tpu.memory_space<vmem>>, vector<16x96xf32>
    %c0_6 = arith.constant 0 : index
    %c0_7 = arith.constant 0 : index
    %5 = vector.load %arg3[%c0_6, %c0_7] : memref<16x96xf32, #tpu.memory_space<vmem>>, vector<16x96xf32>
    %c0_8 = arith.constant 0 : index
    %c0_9 = arith.constant 0 : index
    %6 = vector.load %arg4[%c0_8, %c0_9] : memref<32x16xf32, #tpu.memory_space<vmem>>, vector<32x16xf32>
    %c0_10 = arith.constant 0 : index
    %c0_11 = arith.constant 0 : index
    %7 = vector.load %arg5[%c0_10, %c0_11] : memref<1x16xf32, #tpu.memory_space<vmem>>, vector<1x16xf32>
    %8 = vector.shape_cast %7 : vector<1x16xf32> to vector<1x16xf32>
    %9 = vector.broadcast %8 : vector<1x16xf32> to vector<16x16xf32>
    %10 = tpu.iota {dimensions = array<i32: 1>} : vector<16x48xi32>
    %11 = tpu.iota {dimensions = array<i32: 0>} : vector<16x48xi32>
    %12 = arith.subi %10, %11 : vector<16x48xi32>
    %c0_12 = arith.constant 0 : index
    %c0_13 = arith.constant 0 : index
    %13 = vector.load %arg1[%c0_12, %c0_13] : memref<16x16xf32, #tpu.memory_space<vmem>>, vector<16x16xf32>
    %c0_i32 = arith.constant 0 : i32
    %c16_i32 = arith.constant 16 : i32
    %14 = arith.muli %c0_i32, %c16_i32 : i32
    %cst_14 = arith.constant dense<0.000000e+00> : vector<16x96xf32>
    %15 = tpu.matmul %13, %4, %cst_14 {dimension_numbers = #tpu.dot_dimension_numbers<[1], [0], [0], [1], [0, 0, 1, 1], [], []>} : vector<16x16xf32>, vector<16x96xf32>, vector<16x96xf32> -> vector<16x96xf32>
    %16 = arith.addf %15, %5 : vector<16x96xf32>
    %17 = vector.extract_strided_slice %16 {offsets = [0, 0], sizes = [16, 32], strides = [1, 1]} : vector<16x96xf32> to vector<16x32xf32>
    %18 = vector.extract_strided_slice %16 {offsets = [0, 32], sizes = [16, 32], strides = [1, 1]} : vector<16x96xf32> to vector<16x32xf32>
    %19 = vector.extract_strided_slice %16 {offsets = [0, 64], sizes = [16, 32], strides = [1, 1]} : vector<16x96xf32> to vector<16x32xf32>
    %20 = arith.index_cast %14 : i32 to index
    %c0_15 = arith.constant 0 : index
    %21 = vector.load %arg7[%20, %c0_15] : memref<48x32xf32, #tpu.memory_space<vmem>>, vector<16x32xf32>
    tpu.vector_store %arg7[%20, %c0_15], %18 {strides = array<i32>} : memref<48x32xf32, #tpu.memory_space<vmem>>, vector<16x32xf32>,
    %22 = arith.index_cast %14 : i32 to index
    %c0_16 = arith.constant 0 : index
    %23 = vector.load %arg8[%22, %c0_16] : memref<48x32xf32, #tpu.memory_space<vmem>>, vector<16x32xf32>
    tpu.vector_store %arg8[%22, %c0_16], %19 {strides = array<i32>} : memref<48x32xf32, #tpu.memory_space<vmem>>, vector<16x32xf32>,
    %c0_17 = arith.constant 0 : index
    %c0_18 = arith.constant 0 : index
    %24 = vector.load %arg7[%c0_17, %c0_18] : memref<48x32xf32, #tpu.memory_space<vmem>>, vector<48x32xf32>
    %cst_19 = arith.constant dense<0.000000e+00> : vector<16x48xf32>
    %25 = tpu.matmul %17, %24, %cst_19 {dimension_numbers = #tpu.dot_dimension_numbers<[1], [1], [0], [0], [0, 0, 1, 0], [], []>} : vector<16x32xf32>, vector<48x32xf32>, vector<16x48xf32> -> vector<16x48xf32>
    %cst_20 = arith.constant 0.176776692 : f32
    %26 = vector.broadcast %cst_20 : f32 to vector<16x48xf32>
    %27 = arith.mulf %25, %26 : vector<16x48xf32>
    %28 = vector.broadcast %14 : i32 to vector<16x48xi32>
    %29 = arith.cmpi sle, %12, %28 : vector<16x48xi32>
    %cst_21 = arith.constant -1.000000e+30 : f32
    %30 = vector.broadcast %cst_21 : f32 to vector<16x48xf32>
    %31 = arith.select %29, %27, %30 : vector<16x48xi1>, vector<16x48xf32>
    %cst_22 = arith.constant dense<0xFF800000> : vector<16xf32>
    %32 = vector.multi_reduction <maximumf>, %31, %cst_22 [1] : vector<16x48xf32> to vector<16xf32>
    %33 = vector.shape_cast %32 : vector<16xf32> to vector<16x1xf32>
    %34 = vector.broadcast %33 : vector<16x1xf32> to vector<16x48xf32>
    %35 = arith.subf %31, %34 : vector<16x48xf32>
    %36 = math.exp %35 : vector<16x48xf32>
    %cst_23 = arith.constant dense<0.000000e+00> : vector<16xf32>
    %37 = vector.multi_reduction <add>, %36, %cst_23 [1] : vector<16x48xf32> to vector<16xf32>
    %38 = vector.shape_cast %37 : vector<16xf32> to vector<16x1xf32>
    %39 = tpu.reciprocal %38 {approx = true} : vector<16x1xf32> -> vector<16x1xf32>
    %40 = vector.broadcast %39 : vector<16x1xf32> to vector<16x48xf32>
    %41 = arith.mulf %36, %40 : vector<16x48xf32>
    %c0_24 = arith.constant 0 : index
    %c0_25 = arith.constant 0 : index
    %42 = vector.load %arg8[%c0_24, %c0_25] : memref<48x32xf32, #tpu.memory_space<vmem>>, vector<48x32xf32>
    %cst_26 = arith.constant dense<0.000000e+00> : vector<16x32xf32>
    %43 = tpu.matmul %41, %42, %cst_26 {dimension_numbers = #tpu.dot_dimension_numbers<[1], [0], [0], [1], [0, 0, 1, 1], [], []>} : vector<16x48xf32>, vector<48x32xf32>, vector<16x32xf32> -> vector<16x32xf32>
    %cst_27 = arith.constant dense<0.000000e+00> : vector<16x16xf32>
    %44 = tpu.matmul %43, %6, %cst_27 {dimension_numbers = #tpu.dot_dimension_numbers<[1], [0], [0], [1], [0, 0, 1, 1], [], []>} : vector<16x32xf32>, vector<32x16xf32>, vector<16x16xf32> -> vector<16x16xf32>
    %45 = arith.addf %44, %9 : vector<16x16xf32>
    %46 = arith.index_cast %c0_i32 : i32 to index
    %c0_28 = arith.constant 0 : index
    %c0_29 = arith.constant 0 : index
    %c0_30 = arith.constant 0 : index
    %47 = vector.load %arg6[%46, %c0_28, %c0_29, %c0_30] : memref<3x1x16x16xf32, #tpu.memory_space<vmem>>, vector<1x1x16x16xf32>
    %48 = vector.shape_cast %47 : vector<1x1x16x16xf32> to vector<16x16xf32>
    %49 = vector.shape_cast %45 : vector<16x16xf32> to vector<1x1x16x16xf32>
    tpu.vector_store %arg6[%46, %c0_28, %c0_29, %c0_30], %49 {strides = array<i32>} : memref<3x1x16x16xf32, #tpu.memory_space<vmem>>, vector<1x1x16x16xf32>,
    %c1_i32 = arith.constant 1 : i32
    %c16_i32_31 = arith.constant 16 : i32
    %50 = arith.muli %c1_i32, %c16_i32_31 : i32
    %cst_32 = arith.constant dense<0.000000e+00> : vector<16x96xf32>
    %51 = tpu.matmul %45, %4, %cst_32 {dimension_numbers = #tpu.dot_dimension_numbers<[1], [0], [0], [1], [0, 0, 1, 1], [], []>} : vector<16x16xf32>, vector<16x96xf32>, vector<16x96xf32> -> vector<16x96xf32>
    %52 = arith.addf %51, %5 : vector<16x96xf32>
    %53 = vector.extract_strided_slice %52 {offsets = [0, 0], sizes = [16, 32], strides = [1, 1]} : vector<16x96xf32> to vector<16x32xf32>
    %54 = vector.extract_strided_slice %52 {offsets = [0, 32], sizes = [16, 32], strides = [1, 1]} : vector<16x96xf32> to vector<16x32xf32>
    %55 = vector.extract_strided_slice %52 {offsets = [0, 64], sizes = [16, 32], strides = [1, 1]} : vector<16x96xf32> to vector<16x32xf32>
    %56 = arith.index_cast %50 : i32 to index
    %c0_33 = arith.constant 0 : index
    %57 = vector.load %arg7[%56, %c0_33] : memref<48x32xf32, #tpu.memory_space<vmem>>, vector<16x32xf32>
    tpu.vector_store %arg7[%56, %c0_33], %54 {strides = array<i32>} : memref<48x32xf32, #tpu.memory_space<vmem>>, vector<16x32xf32>,
    %58 = arith.index_cast %50 : i32 to index
    %c0_34 = arith.constant 0 : index
    %59 = vector.load %arg8[%58, %c0_34] : memref<48x32xf32, #tpu.memory_space<vmem>>, vector<16x32xf32>
    tpu.vector_store %arg8[%58, %c0_34], %55 {strides = array<i32>} : memref<48x32xf32, #tpu.memory_space<vmem>>, vector<16x32xf32>,
    %c0_35 = arith.constant 0 : index
    %c0_36 = arith.constant 0 : index
    %60 = vector.load %arg7[%c0_35, %c0_36] : memref<48x32xf32, #tpu.memory_space<vmem>>, vector<48x32xf32>
    %cst_37 = arith.constant dense<0.000000e+00> : vector<16x48xf32>
    %61 = tpu.matmul %53, %60, %cst_37 {dimension_numbers = #tpu.dot_dimension_numbers<[1], [1], [0], [0], [0, 0, 1, 0], [], []>} : vector<16x32xf32>, vector<48x32xf32>, vector<16x48xf32> -> vector<16x48xf32>
    %cst_38 = arith.constant 0.176776692 : f32
    %62 = vector.broadcast %cst_38 : f32 to vector<16x48xf32>
    %63 = arith.mulf %61, %62 : vector<16x48xf32>
    %64 = vector.broadcast %50 : i32 to vector<16x48xi32>
    %65 = arith.cmpi sle, %12, %64 : vector<16x48xi32>
    %cst_39 = arith.constant -1.000000e+30 : f32
    %66 = vector.broadcast %cst_39 : f32 to vector<16x48xf32>
    %67 = arith.select %65, %63, %66 : vector<16x48xi1>, vector<16x48xf32>
    %cst_40 = arith.constant dense<0xFF800000> : vector<16xf32>
    %68 = vector.multi_reduction <maximumf>, %67, %cst_40 [1] : vector<16x48xf32> to vector<16xf32>
    %69 = vector.shape_cast %68 : vector<16xf32> to vector<16x1xf32>
    %70 = vector.broadcast %69 : vector<16x1xf32> to vector<16x48xf32>
    %71 = arith.subf %67, %70 : vector<16x48xf32>
    %72 = math.exp %71 : vector<16x48xf32>
    %cst_41 = arith.constant dense<0.000000e+00> : vector<16xf32>
    %73 = vector.multi_reduction <add>, %72, %cst_41 [1] : vector<16x48xf32> to vector<16xf32>
    %74 = vector.shape_cast %73 : vector<16xf32> to vector<16x1xf32>
    %75 = tpu.reciprocal %74 {approx = true} : vector<16x1xf32> -> vector<16x1xf32>
    %76 = vector.broadcast %75 : vector<16x1xf32> to vector<16x48xf32>
    %77 = arith.mulf %72, %76 : vector<16x48xf32>
    %c0_42 = arith.constant 0 : index
    %c0_43 = arith.constant 0 : index
    %78 = vector.load %arg8[%c0_42, %c0_43] : memref<48x32xf32, #tpu.memory_space<vmem>>, vector<48x32xf32>
    %cst_44 = arith.constant dense<0.000000e+00> : vector<16x32xf32>
    %79 = tpu.matmul %77, %78, %cst_44 {dimension_numbers = #tpu.dot_dimension_numbers<[1], [0], [0], [1], [0, 0, 1, 1], [], []>} : vector<16x48xf32>, vector<48x32xf32>, vector<16x32xf32> -> vector<16x32xf32>
    %cst_45 = arith.constant dense<0.000000e+00> : vector<16x16xf32>
    %80 = tpu.matmul %79, %6, %cst_45 {dimension_numbers = #tpu.dot_dimension_numbers<[1], [0], [0], [1], [0, 0, 1, 1], [], []>} : vector<16x32xf32>, vector<32x16xf32>, vector<16x16xf32> -> vector<16x16xf32>
    %81 = arith.addf %80, %9 : vector<16x16xf32>
    %82 = arith.index_cast %c1_i32 : i32 to index
    %c0_46 = arith.constant 0 : index
    %c0_47 = arith.constant 0 : index
    %c0_48 = arith.constant 0 : index
    %83 = vector.load %arg6[%82, %c0_46, %c0_47, %c0_48] : memref<3x1x16x16xf32, #tpu.memory_space<vmem>>, vector<1x1x16x16xf32>
    %84 = vector.shape_cast %83 : vector<1x1x16x16xf32> to vector<16x16xf32>
    %85 = vector.shape_cast %81 : vector<16x16xf32> to vector<1x1x16x16xf32>
    tpu.vector_store %arg6[%82, %c0_46, %c0_47, %c0_48], %85 {strides = array<i32>} : memref<3x1x16x16xf32, #tpu.memory_space<vmem>>, vector<1x1x16x16xf32>,
    %c2_i32 = arith.constant 2 : i32
    %c16_i32_49 = arith.constant 16 : i32
    %86 = arith.muli %c2_i32, %c16_i32_49 : i32
    %cst_50 = arith.constant dense<0.000000e+00> : vector<16x96xf32>
    %87 = tpu.matmul %81, %4, %cst_50 {dimension_numbers = #tpu.dot_dimension_numbers<[1], [0], [0], [1], [0, 0, 1, 1], [], []>} : vector<16x16xf32>, vector<16x96xf32>, vector<16x96xf32> -> vector<16x96xf32>
    %88 = arith.addf %87, %5 : vector<16x96xf32>
    %89 = vector.extract_strided_slice %88 {offsets = [0, 0], sizes = [16, 32], strides = [1, 1]} : vector<16x96xf32> to vector<16x32xf32>
    %90 = vector.extract_strided_slice %88 {offsets = [0, 32], sizes = [16, 32], strides = [1, 1]} : vector<16x96xf32> to vector<16x32xf32>
    %91 = vector.extract_strided_slice %88 {offsets = [0, 64], sizes = [16, 32], strides = [1, 1]} : vector<16x96xf32> to vector<16x32xf32>
    %92 = arith.index_cast %86 : i32 to index
    %c0_51 = arith.constant 0 : index
    %93 = vector.load %arg7[%92, %c0_51] : memref<48x32xf32, #tpu.memory_space<vmem>>, vector<16x32xf32>
    tpu.vector_store %arg7[%92, %c0_51], %90 {strides = array<i32>} : memref<48x32xf32, #tpu.memory_space<vmem>>, vector<16x32xf32>,
    %94 = arith.index_cast %86 : i32 to index
    %c0_52 = arith.constant 0 : index
    %95 = vector.load %arg8[%94, %c0_52] : memref<48x32xf32, #tpu.memory_space<vmem>>, vector<16x32xf32>
    tpu.vector_store %arg8[%94, %c0_52], %91 {strides = array<i32>} : memref<48x32xf32, #tpu.memory_space<vmem>>, vector<16x32xf32>,
    %c0_53 = arith.constant 0 : index
    %c0_54 = arith.constant 0 : index
    %96 = vector.load %arg7[%c0_53, %c0_54] : memref<48x32xf32, #tpu.memory_space<vmem>>, vector<48x32xf32>
    %cst_55 = arith.constant dense<0.000000e+00> : vector<16x48xf32>
    %97 = tpu.matmul %89, %96, %cst_55 {dimension_numbers = #tpu.dot_dimension_numbers<[1], [1], [0], [0], [0, 0, 1, 0], [], []>} : vector<16x32xf32>, vector<48x32xf32>, vector<16x48xf32> -> vector<16x48xf32>
    %cst_56 = arith.constant 0.176776692 : f32
    %98 = vector.broadcast %cst_56 : f32 to vector<16x48xf32>
    %99 = arith.mulf %97, %98 : vector<16x48xf32>
    %100 = vector.broadcast %86 : i32 to vector<16x48xi32>
    %101 = arith.cmpi sle, %12, %100 : vector<16x48xi32>
    %cst_57 = arith.constant -1.000000e+30 : f32
    %102 = vector.broadcast %cst_57 : f32 to vector<16x48xf32>
    %103 = arith.select %101, %99, %102 : vector<16x48xi1>, vector<16x48xf32>
    %cst_58 = arith.constant dense<0xFF800000> : vector<16xf32>
    %104 = vector.multi_reduction <maximumf>, %103, %cst_58 [1] : vector<16x48xf32> to vector<16xf32>
    %105 = vector.shape_cast %104 : vector<16xf32> to vector<16x1xf32>
    %106 = vector.broadcast %105 : vector<16x1xf32> to vector<16x48xf32>
    %107 = arith.subf %103, %106 : vector<16x48xf32>
    %108 = math.exp %107 : vector<16x48xf32>
    %cst_59 = arith.constant dense<0.000000e+00> : vector<16xf32>
    %109 = vector.multi_reduction <add>, %108, %cst_59 [1] : vector<16x48xf32> to vector<16xf32>
    %110 = vector.shape_cast %109 : vector<16xf32> to vector<16x1xf32>
    %111 = tpu.reciprocal %110 {approx = true} : vector<16x1xf32> -> vector<16x1xf32>
    %112 = vector.broadcast %111 : vector<16x1xf32> to vector<16x48xf32>
    %113 = arith.mulf %108, %112 : vector<16x48xf32>
    %c0_60 = arith.constant 0 : index
    %c0_61 = arith.constant 0 : index
    %114 = vector.load %arg8[%c0_60, %c0_61] : memref<48x32xf32, #tpu.memory_space<vmem>>, vector<48x32xf32>
    %cst_62 = arith.constant dense<0.000000e+00> : vector<16x32xf32>
    %115 = tpu.matmul %113, %114, %cst_62 {dimension_numbers = #tpu.dot_dimension_numbers<[1], [0], [0], [1], [0, 0, 1, 1], [], []>} : vector<16x48xf32>, vector<48x32xf32>, vector<16x32xf32> -> vector<16x32xf32>
    %cst_63 = arith.constant dense<0.000000e+00> : vector<16x16xf32>
    %116 = tpu.matmul %115, %6, %cst_63 {dimension_numbers = #tpu.dot_dimension_numbers<[1], [0], [0], [1], [0, 0, 1, 1], [], []>} : vector<16x32xf32>, vector<32x16xf32>, vector<16x16xf32> -> vector<16x16xf32>
    %117 = arith.addf %116, %9 : vector<16x16xf32>
    %118 = arith.index_cast %c2_i32 : i32 to index
    %c0_64 = arith.constant 0 : index
    %c0_65 = arith.constant 0 : index
    %c0_66 = arith.constant 0 : index
    %119 = vector.load %arg6[%118, %c0_64, %c0_65, %c0_66] : memref<3x1x16x16xf32, #tpu.memory_space<vmem>>, vector<1x1x16x16xf32>
    %120 = vector.shape_cast %119 : vector<1x1x16x16xf32> to vector<16x16xf32>
    %121 = vector.shape_cast %117 : vector<16x16xf32> to vector<1x1x16x16xf32>
    tpu.vector_store %arg6[%118, %c0_64, %c0_65, %c0_66], %121 {strides = array<i32>} : memref<3x1x16x16xf32, #tpu.memory_space<vmem>>, vector<1x1x16x16xf32>,
    %c3_i32 = arith.constant 3 : i32
    return
  }
  func.func @transform_0(%arg0: i32) -> (i32, i32) {
    %c0_i32 = arith.constant 0 : i32
    %c0_i32_0 = arith.constant 0 : i32
    return %arg0, %c0_i32 : i32, i32
  }
  func.func @transform_1(%arg0: i32) -> (i32, i32) {
    %c0_i32 = arith.constant 0 : i32
    %c0_i32_0 = arith.constant 0 : i32
    %c0_i32_1 = arith.constant 0 : i32
    return %c0_i32, %c0_i32_0 : i32, i32
  }
  func.func @transform_2(%arg0: i32) -> (i32, i32) {
    %c0_i32 = arith.constant 0 : i32
    %c0_i32_0 = arith.constant 0 : i32
    %c0_i32_1 = arith.constant 0 : i32
    return %c0_i32, %c0_i32_0 : i32, i32
  }
  func.func @transform_3(%arg0: i32) -> (i32, i32) {
    %c0_i32 = arith.constant 0 : i32
    %c0_i32_0 = arith.constant 0 : i32
    %c0_i32_1 = arith.constant 0 : i32
    return %c0_i32, %c0_i32_0 : i32, i32
  }
  func.func @transform_4(%arg0: i32) -> (i32, i32) {
    %c0_i32 = arith.constant 0 : i32
    %c0_i32_0 = arith.constant 0 : i32
    %c0_i32_1 = arith.constant 0 : i32
    return %c0_i32, %c0_i32_0 : i32, i32
  }
  func.func @transform_5(%arg0: i32) -> (i32, i32, i32, i32) {
    %c0_i32 = arith.constant 0 : i32
    %c0_i32_0 = arith.constant 0 : i32
    %c0_i32_1 = arith.constant 0 : i32
    %c0_i32_2 = arith.constant 0 : i32
    return %c0_i32, %arg0, %c0_i32_0, %c0_i32_1 : i32, i32, i32, i32
  }
}

</mosaic_0001>

<bundles_post_ra>
// kernel: causal_ms_pipeline.1
= control target key start
LH: loop header
LB: loop body
LE: loop exit
PB: predicated region body
PF: predicated region fallthrough
CT: control target
= control target key end

     0   :  { %s2090_s18 = smov 0   ;;  %s2092_s19 = smov 0   ;;  %s2386_s0 = inlined_call_operand.vmem [shape: f32[32,16], index: 0, kind: input, shape index: {}]   ;;  %s2387_s1 = inlined_call_operand.vmem [shape: f32[16,96], index: 1, kind: input, shape index: {}]   ;;  %s2388_s2 = inlined_call_operand.vmem [shape: f32[16,96], index: 2, kind: input, shape index: {}]   ;;  %s2389_s3 = inlined_call_operand.vmem [shape: f32[32,16], index: 3, kind: input, shape index: {}]   ;;  %s2390_s4 = inlined_call_operand.vmem [shape: f32[1,16], index: 4, kind: input, shape index: {}]   ;;  %s2391_s5 = inlined_call_operand.vmem [shape: f32[3,2,16,16], index: 5, kind: output, shape index: {}]  }
   0x1   :  { %s2094_s20 = smov 0  }
   0x2 LB: > { %s2103_s21 = sadd.s32 4294967295, %s2055_s20   ;;  %s2105_s22 = sadd.s32 1, %s2055_s20   ;;  %s2055_s20 = sphi %s2094_s20, %s2397_s20   ;;  %s2051_s19 = sphi %s2092_s19, %s2396_s19   ;;  %s2047_s18 = sphi %s2090_s18, %s2395_s18  }
   0x3   : > { %s129_s23 = ssub.s32 %s2055_s20, %s2105_s22  ;;  %s132_s24 = sadd.s32 1, %s2051_s19 }
   0x4   : > { %p130_p0 = scmp.eq.s32.totalorder %s129_s23, 0  ;;  %p142_p1 = scmp.ne.s32.totalorder %s2051_s19, %s2047_s18 }
   0x5   : > { %p143_p2 = scmp.eq.s32.totalorder %s2103_s21, 1  ;;  %p1578_p3 = scmp.ge.s32.totalorder %s2055_s20, 1 }
   0x6   : > { %s2113_s25 = scalar_select %p130_p0, %s2051_s19, %s132_s24  }
   0x7   : > { %p2115_p4 = por %p143_p2, %p142_p1  ;;  %p188_p5 = scmp.lt.s32.totalorder %s2055_s20, 3 }
   0x9   : > { %p189_p6 = pnand %p1578_p3, %p188_p5 }
   0xa   : > { %v234_v0 = vld [vmem:[%s2387_s1] sm:$0xff] (!%p189_p6)  ;;  %v235_v1 = vld [vmem:[%s2387_s1 + $0x8] sm:$0xff] (!%p189_p6)  ;;  %s1579_s6 = sshll.u32 (!%p189_p6), %s2103_s21, 1  ;;  %vm258_vm0 = vcmask (!%p189_p6), 130048   ;;  %vm221_vm1 = vcmask (!%p189_p6), 261120   ;;  %v2057_v5 = vmov (!%p189_p6), 0.0   ;;  %v249_v24 = vlaneseq (!%p189_p6) }
   0xb   : > { %192 = sbr.rel (%p189_p6) target bundleno = 4028 (0xfbc), region = 40  ;;  %v2126_v2 = vpack.c.bf16 (!%p189_p6), %v235_v1, %v234_v0  ;;  %p216_p7 = scmp.lt.s32.totalorder (!%p189_p6), %s1579_s6, 3  ;;  %222 = vst.msk [vmem:[#allocation2] sm:$0xff] (!%p189_p6), %vm221_vm1, %v2057_v5  ;;  %223 = vst.msk [vmem:[#allocation2 + $0x8] sm:$0xff] (!%p189_p6), %vm221_vm1, %v2057_v5  ;;  %v2150_v6 = vld [vmem:[%s2388_s2] sm:$0xff] (!%p189_p6)  ;;  %v2158_v10 = vld [vmem:[%s2388_s2 + $0x8] sm:$0xff] (!%p189_p6) }
   0xc   : > { %224 = vst.msk [vmem:[#allocation2 + $0x10] sm:$0xff] (!%p189_p6), %vm221_vm1, %v2057_v5  ;;  %225 = vst.msk [vmem:[#allocation2 + $0x18] sm:$0xff] (!%p189_p6), %vm221_vm1, %v2057_v5  ;;  %s2058_s15 = smov (!%p189_p6), 96   ;;  %v252_v25 = vshrl.u32 (!%p189_p6), %v249_v24, 7  ;;  %v250_v26 = vand.u32 (!%p189_p6), 127, %v249_v24  ;;  %vm467_vm4 = vcmask (!%p189_p6), 392192  }
   0xd   : > { %1856 = vmatprep.subr.bf16.mxu0 (!%p189_p6), %v2126_v2  ;;  %226 = vst.msk [vmem:[#allocation2 + $0x20] sm:$0xff] (!%p189_p6), %vm221_vm1, %v2057_v5  ;;  %227 = vst.msk [vmem:[#allocation2 + $0x28] sm:$0xff] (!%p189_p6), %vm221_vm1, %v2057_v5  ;;  %s2059_s16 = smov (!%p189_p6), 64   ;;  %v238_v63 = vld [vmem:[%s2389_s3] sm:$0xff] (!%p189_p6)  ;;  %v239_v0 = vld [vmem:[%s2389_s3 + $0x8] sm:$0xff] (!%p189_p6) }
   0xe   : > { %1858 = vmatpush3.bf16.msra.mxu0 (!%p189_p6), %v2126_v2  ;;  %228 = vst.msk [vmem:[#allocation3] sm:$0xff] (!%p189_p6), %vm221_vm1, %v2057_v5  ;;  %229 = vst.msk [vmem:[#allocation3 + $0x8] sm:$0xff] (!%p189_p6), %vm221_vm1, %v2057_v5  ;;  %v253_v27 = vadd.s32 (!%p189_p6), 8, %v252_v25  ;;  %v2201_v28 = vsub.s32 (!%p189_p6), %v250_v26, %v252_v25  ;;  %v2230_v1 = vpack.c.bf16 (!%p189_p6), %v239_v0, %v238_v63 }
   0xf   : > { %230 = vst.msk [vmem:[#allocation3 + $0x10] sm:$0xff] (!%p189_p6), %vm221_vm1, %v2057_v5  ;;  %231 = vst.msk [vmem:[#allocation3 + $0x18] sm:$0xff] (!%p189_p6), %vm221_vm1, %v2057_v5 }
  0x10   : > { %232 = vst.msk [vmem:[#allocation3 + $0x20] sm:$0xff] (!%p189_p6), %vm221_vm1, %v2057_v5  ;;  %233 = vst.msk [vmem:[#allocation3 + $0x28] sm:$0xff] (!%p189_p6), %vm221_vm1, %v2057_v5  ;;  %v2203_v29 = vsub.s32 (!%p189_p6), %v250_v26, %v253_v27  ;;  %vm463_vm3 = vcmp.le.s32.totalorder (!%p189_p6), %v2201_v28, 0  ;;  %v241_v5 = vld [vmem:[%s2389_s3 + $0x18] sm:$0xff] (!%p189_p6)  ;;  %vm864_vm7 = vcmp.le.s32.totalorder (!%p189_p6), %v2201_v28, 16  ;;  %vm1265_vm9 = vcmp.le.s32.totalorder (!%p189_p6), %v2201_v28, 32 }
  0x11   : > { %vm2170_vm2 = vmpackc.low (!%p189_p6), %vm221_vm1, %vm221_vm1 }
  0x12   : > { %s2399_s6 = smov (!%p216_p7, %s1579_s6), 3  ;;  %vm464_vm5 = vcmp.le.s32.totalorder %v2203_v29, 0  ;;  %vm865_vm6 = vcmp.le.s32.totalorder %v2203_v29, 16  ;;  %vm1266_vm8 = vcmp.le.s32.totalorder %v2203_v29, 32 }
  0x13   : > { %s1580_s7 = sshll.u32 %s2399_s6, 3  ;;  %v360_v14 = vld [vmem:[#allocation2 + $0x10] sm:$0xff]  ;;  %v361_v15 = vld [vmem:[#allocation2 + $0x18] sm:$0xff]  ;;  %s212_s6 = sand.u32 1, %s2047_s18  }
  0x14   : > { %s219_s10 = scalar_lea.vmem %s2386_s0, %s1580_s7  ;;  %v1865_v20 = vpack.c.bf16 %v361_v15, %v360_v14  ;;  %v362_v21 = vld [vmem:[#allocation2 + $0x20] sm:$0xff]  ;;  %v363_v22 = vld [vmem:[#allocation2 + $0x28] sm:$0xff]  ;;  %s1981_s7 = smul.u32 48, %s212_s6 }
  0x15   : > { %v256_v3 = vld [vmem:[%s219_s10] sm:$0xff]  ;;  %v257_v4 = vld [vmem:[%s219_s10 + $0x8] sm:$0xff]  ;;  %v2184_v23 = vpack.c.bf16 %v363_v22, %v362_v21  ;;  %s1632_s18 = sshll.u32 (%p2115_p4), %s2103_s21, 4 }
  0x16   : > { %1715 = vmatprep.mubr.msk.f32.mxu0 %vm258_vm0, %v256_v3  ;;  %v492_v54 = vld [vmem:[#allocation3 + $0x10] sm:$0xff]  ;;  %v493_v55 = vld [vmem:[#allocation3 + $0x18] sm:$0xff]  ;;  %s2259_s10 = scalar_lea.vmem [#allocation4], %s1981_s7  ;;  %s1471_s13 = scalar_lea.vmem (%p2115_p4), %s2391_s5, %s1632_s18 }
  0x17   : > { %1716 = vmatmul.mubr.msk.f32.vlgmr.msra.gmra.mrb[0].mxu0 %vm258_vm0, %v257_v4  ;;  %v1881_v59 = vpack.c.bf16 %v493_v55, %v492_v54  ;;  %v494_v60 = vld [vmem:[#allocation3 + $0x20] sm:$0xff]  ;;  %v495_v61 = vld [vmem:[#allocation3 + $0x28] sm:$0xff] }
  0x18   : > { %v2221_v62 = vpack.c.bf16 %v495_v61, %v494_v60  ;;  %v240_v4 = vld [vmem:[%s2389_s3 + $0x10] sm:$0xff] }
  0xea   : > { %v1717_v7 = vpop.f32.mrb[0].mxu0 }
  0xeb   : > { %v331_v8 = vpop.f32.mrb[1].mxu0  ;;  %v337_v11 = vadd.f32 %v1717_v7, %v2158_v10 }
  0xec   : > { %v2153_v9 = vadd.f32 %v331_v8, %v2150_v6  ;;  %v2240_v8 = vpack.c.bf16 %v241_v5, %v240_v4 }
  0xee   : > { %342 = vrot.lane.b32.xlu0 %v2153_v9, %s2058_s15  ;;  %1730 = vmatprep.mubr.msk.f32.mxu1 %vm221_vm1, %v2153_v9 }
  0xf2   : > { %344 = vrot.lane.b32.xlu0 %v337_v11, %s2058_s15 }
 0x160   : > { %v343_v12 = vpop.permute.xlu0 %342 }
 0x161   : > { %348 = vst.msk [vmem:[#allocation2] sm:$0xff] %vm221_vm1, %v343_v12  ;;  %v2255_v12 = vld [vmem:[%s2390_s4] ss:$0 sm:$0xff] }
 0x164   : > { %v345_v13 = vpop.permute.xlu0 %344 }
 0x165   : > { %349 = vst.msk [vmem:[#allocation2 + $0x8] sm:$0xff] %vm221_vm1, %v345_v13 }
 0x168   : > { %v358_v16 = vld [vmem:[#allocation2] sm:$0xff] }
 0x16c   : > { %v359_v17 = vld [vmem:[#allocation2 + $0x8] sm:$0xff] }
 0x16d   : > { %v2174_v19 = vpack.c.bf16 %v359_v17, %v358_v16 }
 0x16f   : > { %1861 = vmatprep.subr.msk.bf16.mxu1 %vm2170_vm2, %v2174_v19 }
 0x170   : > { %1864 = vmatpush3.bf16.xpose.msk.msra.mxu1 %vm2170_vm2, %v2174_v19 }
 0x171   : > { %1867 = vmatprep.subr.msk.bf16.mxu1 %vm2170_vm2, %v1865_v20 }
 0x178   : > { %1870 = vmatpush3.bf16.xpose.msk.msra.mxu1 %vm2170_vm2, %v1865_v20 }
 0x179   : > { %1873 = vmatprep.subr.msk.bf16.mxu1 %vm2170_vm2, %v2184_v23 }
 0x180   : > { %1876 = vmatpush3.bf16.xpose.msk.msra.mxu1 %vm2170_vm2, %v2184_v23 }
 0x181   : > { %1903 = vmatprep.subr.msk.bf16.mxu1 %vm2170_vm2, %v2174_v19 }
 0x187   : > { %1731 = vmatmul.mubr.msk.f32.vlgmr.msra.gmra.mrb[0].mxu1 %vm221_vm1, %v337_v11 }
 0x188   : > { %1906 = vmatpush3.bf16.xpose.msk.msra.mxu1 %vm2170_vm2, %v2174_v19 }
 0x25a   : > { %v1732_v30 = vpop.f32.mrb[0].mxu1 }
 0x25b   : > { %v452_v31 = vpop.f32.mrb[1].mxu1  ;;  %v462_v32 = vmul.f32 0.17677669, %v1732_v30 }
 0x25c   : > { %v461_v33 = vmul.f32 0.17677669, %v452_v31 }
 0x25d   : > { %v466_v36 = vsel %vm464_vm5, %v462_v32, -1e+30 }
 0x25e   : > { %v465_v34 = vsel %vm463_vm3, %v461_v33, -1e+30  ;;  %v471_v37 = vsel %vm467_vm4, %v466_v36, -inf }
 0x25f   : > { %v468_v35 = vsel %vm467_vm4, %v465_v34, -inf }
 0x260   : > { %469 = vmax.xlane.f32.xlu1 %v468_v35 }
 0x264   : > { %472 = vmax.xlane.f32.xlu1 %v471_v37 }
 0x2ed   : > { %v470_v38 = vpop.xlane.xlu1 %469 }
 0x2ee   : > { %v474_v39 = vsub.f32 %v465_v34, %v470_v38 }
 0x2f0   : > { %v476_v40 = vmul.f32 1.442695, %v474_v39 }
 0x2f1   : > { %v473_v41 = vpop.xlane.xlu1 %472 }
 0x2f2   : > { %2009 = vpow2.f32 %v476_v40  ;;  %v475_v42 = vsub.f32 %v466_v36, %v473_v41 }
 0x2f4   : > { %v478_v43 = vmul.f32 1.442695, %v475_v42 }
 0x2f6   : > { %2011 = vpow2.f32 %v478_v43 }
 0x2fc   : > { %v2010_v44 = vpop.eup %2009 }
 0x2fd   : > { %v480_v45 = vsel %vm467_vm4, %v2010_v44, 0.0 }
 0x2fe   : > { %481 = vadd.xlane.f32.xlu0 %v480_v45 }
 0x300   : > { %v2012_v46 = vpop.eup %2011 }
 0x301   : > { %v483_v47 = vsel %vm467_vm4, %v2012_v46, 0.0 }
 0x302   : > { %484 = vadd.xlane.f32.xlu1 %v483_v47 }
 0x313   : > { %350 = vrot.lane.b32.xlu1 %v2153_v9, %s2059_s16 }
 0x317   : > { %352 = vrot.lane.b32.xlu1 %v337_v11, %s2059_s16 }
 0x38b   : > { %v482_v48 = vpop.xlane.xlu0 %481 }
 0x38c   : > { %2013 = vrcp.f32 %v482_v48 }
 0x38f   : > { %v485_v49 = vpop.xlane.xlu1 %484 }
 0x390   : > { %2015 = vrcp.f32 %v485_v49 }
 0x393   : > { %v351_v50 = vpop.permute.xlu1 %350 }
 0x394   : > { %356 = vst.msk [vmem:[#allocation3] sm:$0xff] %vm221_vm1, %v351_v50 }
 0x396   : > { %v2014_v51 = vpop.eup %2013 }
 0x397   : > { %v353_v52 = vpop.permute.xlu1 %352  ;;  %v488_v53 = vmul.f32 %v2014_v51, %v2010_v44 }
 0x398   : > { %357 = vst.msk [vmem:[#allocation3 + $0x8] sm:$0xff] %vm221_vm1, %v353_v52 }
 0x399   : > { %1745 = vmatprep.mubr.msk.f32.mxu0 %vm467_vm4, %v488_v53 }
 0x39a   : > { %v2016_v3 = vpop.eup %2015 }
 0x39b   : > { %v490_v56 = vld [vmem:[#allocation3] sm:$0xff]  ;;  %v489_v7 = vmul.f32 %v2016_v3, %v2012_v46 }
 0x39f   : > { %v491_v57 = vld [vmem:[#allocation3 + $0x8] sm:$0xff] }
 0x3a0   : > { %v2217_v58 = vpack.c.bf16 %v491_v57, %v490_v56 }
 0x3a2   : > { %1878 = vmatprep.subr.bf16.mxu0 %v2217_v58 }
 0x3a3   : > { %1880 = vmatpush3.bf16.msra.mxu0 %v2217_v58 }
 0x3a4   : > { %1882 = vmatprep.subr.bf16.mxu0 %v1881_v59 }
 0x3a7   : > { %1884 = vmatpush3.bf16.msra.mxu0 %v1881_v59 }
 0x3a8   : > { %1886 = vmatprep.subr.bf16.mxu0 %v2221_v62 }
 0x3ab   : > { %1888 = vmatpush3.bf16.msra.mxu0 %v2221_v62 }
 0x3ac   : > { %1890 = vmatprep.subr.bf16.mxu0 %v2230_v1 }
 0x3ae   : > { %1746 = vmatmul.mubr.msk.f32.vlgmr.msra.gmra.mrb[2].mxu0 %vm467_vm4, %v489_v7 }
 0x3af   : > { %1892 = vmatpush3.bf16.msra.mxu0 %v2230_v1 }
 0x3b0   : > { %1894 = vmatprep.subr.bf16.mxu0 %v2240_v8 }
 0x3b3   : > { %1896 = vmatpush3.bf16.msra.mxu0 %v2240_v8 }
 0x3b4   : > { %1898 = vmatprep.subr.bf16.mxu0 %v2126_v2 }
 0x481   : > { %v1747_v9 = vpop.f32.mrb[2].mxu0 }
 0x482   : > { %v568_v11 = vpop.f32.mrb[3].mxu0 }
 0x483   : > { %1756 = vmatprep.mubr.msk.f32.mxu0 %vm221_vm1, %v568_v11 }
 0x484   : > { %1757 = vmatmul.mubr.msk.f32.vlgmr.msra.gmra.mrb[4].mxu0 %vm221_vm1, %v1747_v9 }
 0x485   : > { %1900 = vmatpush3.bf16.msra.mxu0 %v2126_v2 }
 0x486   : > { %1920 = vmatprep.subr.bf16.mxu0 %v2217_v58 }
 0x557   : > { %v1758_v13 = vpop.f32.mrb[4].mxu0 }
 0x558   : > { %v655_v14 = vadd.f32 %v1758_v13, %v2255_v12  ;;  %v649_v15 = vpop.f32.mrb[5].mxu0 }
 0x559   : > { %v650_v16 = vadd.f32 %v2255_v12, %v649_v15 }
 0x55a   : > { %659 = vst.msk [vmem:[%s2259_s10 + $0x8] sm:$0xff] %vm258_vm0, %v655_v14 }
 0x55b   : > { %658 = vst.msk [vmem:[%s2259_s10] sm:$0xff] %vm258_vm0, %v650_v16  ;;  %1763 = vmatprep.mubr.msk.f32.mxu0 %vm258_vm0, %v650_v16 }
 0x55c   : > { %1764 = vmatmul.mubr.msk.f32.vlgmr.msra.gmra.mrb[6].mxu0 %vm258_vm0, %v655_v14 }
 0x55d   : > { %1922 = vmatpush3.bf16.msra.mxu0 %v2217_v58 }
 0x62f   : > { %v1765_v17 = vpop.f32.mrb[6].mxu0 }
 0x630   : > { %v732_v20 = vpop.f32.mrb[7].mxu0  ;;  %v738_v22 = vadd.f32 %v1765_v17, %v2158_v10 }
 0x631   : > { %v733_v21 = vadd.f32 %v732_v20, %v2150_v6 }
 0x633   : > { %743 = vrot.lane.b32.xlu1 %v733_v21, %s2058_s15  ;;  %1778 = vmatprep.mubr.msk.f32.mxu1 %vm221_vm1, %v733_v21 }
 0x637   : > { %745 = vrot.lane.b32.xlu1 %v738_v22, %s2058_s15 }
 0x6a5   : > { %v744_v24 = vpop.permute.xlu1 %743 }
 0x6a6   : > { %749 = vst.msk [vmem:[#allocation2 + $0x10] sm:$0xff] %vm221_vm1, %v744_v24 }
 0x6a9   : > { %v746_v25 = vpop.permute.xlu1 %745 }
 0x6aa   : > { %750 = vst.msk [vmem:[#allocation2 + $0x18] sm:$0xff] %vm221_vm1, %v746_v25 }
 0x6ad   : > { %v761_v26 = vld [vmem:[#allocation2 + $0x10] sm:$0xff] }
 0x6b1   : > { %v762_v27 = vld [vmem:[#allocation2 + $0x18] sm:$0xff] }
 0x6b2   : > { %v1907_v30 = vpack.c.bf16 %v762_v27, %v761_v26 }
 0x6b4   : > { %1909 = vmatprep.subr.msk.bf16.mxu1 %vm2170_vm2, %v1907_v30 }
 0x6b5   : > { %1912 = vmatpush3.bf16.xpose.msk.msra.mxu1 %vm2170_vm2, %v1907_v30 }
 0x6b6   : > { %1915 = vmatprep.subr.msk.bf16.mxu1 %vm2170_vm2, %v2184_v23 }
 0x6bd   : > { %1918 = vmatpush3.bf16.xpose.msk.msra.mxu1 %vm2170_vm2, %v2184_v23 }
 0x6be   : > { %1945 = vmatprep.subr.msk.bf16.mxu1 %vm2170_vm2, %v2174_v19 }
 0x6c4   : > { %1779 = vmatmul.mubr.msk.f32.vlgmr.msra.gmra.mrb[2].mxu1 %vm221_vm1, %v738_v22 }
 0x6c5   : > { %1948 = vmatpush3.bf16.xpose.msk.msra.mxu1 %vm2170_vm2, %v2174_v19 }
 0x6c6   : > { %1951 = vmatprep.subr.msk.bf16.mxu1 %vm2170_vm2, %v1907_v30 }
 0x6cd   : > { %1954 = vmatpush3.bf16.xpose.msk.msra.mxu1 %vm2170_vm2, %v1907_v30 }
 0x797   : > { %v1780_v31 = vpop.f32.mrb[2].mxu1 }
 0x798   : > { %v863_v23 = vmul.f32 0.17677669, %v1780_v31  ;;  %v853_v32 = vpop.f32.mrb[3].mxu1 }
 0x799   : > { %v862_v33 = vmul.f32 0.17677669, %v853_v32 }
 0x79a   : > { %v867_v34 = vsel %vm865_vm6, %v863_v23, -1e+30 }
 0x79b   : > { %v871_v35 = vsel %vm467_vm4, %v867_v34, -inf  ;;  %v866_v36 = vsel %vm864_vm7, %v862_v33, -1e+30 }
 0x79c   : > { %872 = vmax.xlane.f32.xlu1 %v871_v35  ;;  %v868_v19 = vsel %vm467_vm4, %v866_v36, -inf }
 0x79d   : > { %869 = vmax.xlane.f32.xlu0 %v868_v19 }
 0x7b3   : > { %751 = vrot.lane.b32.xlu0 %v733_v21, %s2059_s16 }
 0x829   : > { %v873_v37 = vpop.xlane.xlu1 %872 }
 0x82a   : > { %v875_v38 = vsub.f32 %v867_v34, %v873_v37  ;;  %v870_v39 = vpop.xlane.xlu0 %869 }
 0x82b   : > { %v874_v40 = vsub.f32 %v866_v36, %v870_v39 }
 0x82c   : > { %v878_v41 = vmul.f32 1.442695, %v875_v38 }
 0x82d   : > { %v876_v42 = vmul.f32 1.442695, %v874_v40 }
 0x82e   : > { %2017 = vpow2.f32 %v878_v41  ;;  %v752_v43 = vpop.permute.xlu0 %751 }
 0x82f   : > { %757 = vst.msk [vmem:[#allocation3 + $0x10] sm:$0xff] %vm221_vm1, %v752_v43  ;;  %2019 = vpow2.f32 %v876_v42 }
 0x836   : > { %v892_v53 = vld [vmem:[#allocation3 + $0x10] sm:$0xff] }
 0x838   : > { %v2018_v44 = vpop.eup %2017 }
 0x839   : > { %v883_v45 = vsel %vm467_vm4, %v2018_v44, 0.0  ;;  %v2020_v46 = vpop.eup %2019 }
 0x83a   : > { %884 = vadd.xlane.f32.xlu0 %v883_v45  ;;  %v880_v47 = vsel %vm467_vm4, %v2020_v46, 0.0 }
 0x83e   : > { %881 = vadd.xlane.f32.xlu0 %v880_v47 }
 0x854   : > { %753 = vrot.lane.b32.xlu0 %v738_v22, %s2059_s16 }
 0x8c7   : > { %v885_v48 = vpop.xlane.xlu0 %884 }
 0x8cb   : > { %v882_v49 = vpop.xlane.xlu0 %881 }
 0x8cc   : > { %2021 = vrcp.f32 %v882_v49 }
 0x8cd   : > { %2023 = vrcp.f32 %v885_v48 }
 0x8cf   : > { %v754_v50 = vpop.permute.xlu0 %753 }
 0x8d0   : > { %758 = vst.msk [vmem:[#allocation3 + $0x18] sm:$0xff] %vm221_vm1, %v754_v50 }
 0x8d6   : > { %v2022_v51 = vpop.eup %2021 }
 0x8d7   : > { %v888_v52 = vmul.f32 %v2022_v51, %v2020_v46  ;;  %v893_v54 = vld [vmem:[#allocation3 + $0x18] sm:$0xff]  ;;  %v2024_v56 = vpop.eup %2023 }
 0x8d8   : > { %v1923_v55 = vpack.c.bf16 %v893_v54, %v892_v53  ;;  %v889_v57 = vmul.f32 %v2024_v56, %v2018_v44 }
 0x8d9   : > { %1793 = vmatprep.mubr.msk.f32.mxu0 %vm467_vm4, %v888_v52 }
 0x8da   : > { %1924 = vmatprep.subr.bf16.mxu0 %v1923_v55 }
 0x8db   : > { %1926 = vmatpush3.bf16.msra.mxu0 %v1923_v55 }
 0x8dc   : > { %1928 = vmatprep.subr.bf16.mxu0 %v2221_v62 }
 0x8df   : > { %1930 = vmatpush3.bf16.msra.mxu0 %v2221_v62 }
 0x8e0   : > { %1932 = vmatprep.subr.bf16.mxu0 %v2230_v1 }
 0x8e2   : > { %1794 = vmatmul.mubr.msk.f32.vlgmr.msra.gmra.mrb[8].mxu0 %vm467_vm4, %v889_v57 }
 0x8e3   : > { %1934 = vmatpush3.bf16.msra.mxu0 %v2230_v1 }
 0x8e4   : > { %1936 = vmatprep.subr.bf16.mxu0 %v2240_v8 }
 0x8e7   : > { %1938 = vmatpush3.bf16.msra.mxu0 %v2240_v8 }
 0x8e8   : > { %1940 = vmatprep.subr.bf16.mxu0 %v2126_v2 }
 0x9b5   : > { %v1795_v59 = vpop.f32.mrb[8].mxu0 }
 0x9b6   : > { %v968_v60 = vpop.f32.mrb[9].mxu0 }
 0x9b7   : > { %1804 = vmatprep.mubr.msk.f32.mxu0 %vm221_vm1, %v968_v60 }
 0x9b8   : > { %1805 = vmatmul.mubr.msk.f32.vlgmr.msra.gmra.mrb[10].mxu0 %vm221_vm1, %v1795_v59 }
 0x9b9   : > { %1942 = vmatpush3.bf16.msra.mxu0 %v2126_v2 }
 0x9ba   : > { %1962 = vmatprep.subr.bf16.mxu0 %v2217_v58 }
 0xa8b   : > { %v1806_v61 = vpop.f32.mrb[10].mxu0 }
 0xa8c   : > { %v1055_v62 = vadd.f32 %v1806_v61, %v2255_v12  ;;  %v1049_v63 = vpop.f32.mrb[11].mxu0 }
 0xa8d   : > { %v1050_v0 = vadd.f32 %v2255_v12, %v1049_v63 }
 0xa8e   : > { %1611 = vst.msk [vmem:[%s2259_s10 + $0x18] sm:$0xff] %vm258_vm0, %v1055_v62 }
 0xa8f   : > { %1610 = vst.msk [vmem:[%s2259_s10 + $0x10] sm:$0xff] %vm258_vm0, %v1050_v0  ;;  %1811 = vmatprep.mubr.msk.f32.mxu0 %vm258_vm0, %v1050_v0 }
 0xa90   : > { %1812 = vmatmul.mubr.msk.f32.vlgmr.msra.gmra.mrb[12].mxu0 %vm258_vm0, %v1055_v62 }
 0xa91   : > { %1964 = vmatpush3.bf16.msra.mxu0 %v2217_v58 }
 0xa92   : > { %1966 = vmatprep.subr.bf16.mxu0 %v1923_v55 }
 0xa95   : > { %1968 = vmatpush3.bf16.msra.mxu0 %v1923_v55 }
 0xa96   : > { %v1513_v47 = vld [vmem:[%s2259_s10 + $0x10] sm:$0xff] (%p2115_p4) }
 0xa97   : > { %1514 = vst [vmem:[%s1471_s13 + $0x20] sm:$0xff] (%p2115_p4), %v1513_v47 }
 0xb63   : > { %v1813_v2 = vpop.f32.mrb[12].mxu0 }
 0xb64   : > { %v1139_v3 = vadd.f32 %v1813_v2, %v2158_v10  ;;  %v1133_v4 = vpop.f32.mrb[13].mxu0 }
 0xb65   : > { %v1134_v5 = vadd.f32 %v1133_v4, %v2150_v6 }
 0xb66   : > { %1146 = vrot.lane.b32.xlu1 %v1139_v3, %s2058_s15 }
 0xb67   : > { %1144 = vrot.lane.b32.xlu0 %v1134_v5, %s2058_s15  ;;  %1826 = vmatprep.mubr.msk.f32.mxu1 %vm221_vm1, %v1134_v5 }
 0xbd8   : > { %v1147_v7 = vpop.permute.xlu1 %1146 }
 0xbd9   : > { %1151 = vst.msk [vmem:[#allocation2 + $0x28] sm:$0xff] %vm221_vm1, %v1147_v7  ;;  %v1145_v9 = vpop.permute.xlu0 %1144 }
 0xbda   : > { %1150 = vst.msk [vmem:[#allocation2 + $0x20] sm:$0xff] %vm221_vm1, %v1145_v9 }
 0xbe0   : > { %v1165_v58 = vld [vmem:[#allocation2 + $0x28] sm:$0xff] }
 0xbe1   : > { %v1164_v11 = vld [vmem:[#allocation2 + $0x20] sm:$0xff] }
 0xbe2   : > { %v1955_v13 = vpack.c.bf16 %v1165_v58, %v1164_v11 }
 0xbe4   : > { %1957 = vmatprep.subr.msk.bf16.mxu1 %vm2170_vm2, %v1955_v13 }
 0xbe5   : > { %1960 = vmatpush3.bf16.xpose.msk.msra.mxu1 %vm2170_vm2, %v1955_v13 }
 0xbec   : > { %1827 = vmatmul.mubr.msk.f32.vlgmr.msra.gmra.mrb[4].mxu1 %vm221_vm1, %v1139_v3 }
 0xcbf   : > { %v1828_v6 = vpop.f32.mrb[4].mxu1 }
 0xcc0   : > { %v1264_v10 = vmul.f32 0.17677669, %v1828_v6  ;;  %v1254_v14 = vpop.f32.mrb[5].mxu1 }
 0xcc1   : > { %v1263_v15 = vmul.f32 0.17677669, %v1254_v14 }
 0xcc2   : > { %v1268_v16 = vsel %vm1266_vm8, %v1264_v10, -1e+30 }
 0xcc3   : > { %v1272_v17 = vsel %vm467_vm4, %v1268_v16, -inf  ;;  %v1267_v20 = vsel %vm1265_vm9, %v1263_v15, -1e+30 }
 0xcc4   : > { %1273 = vmax.xlane.f32.xlu1 %v1272_v17  ;;  %v1269_v21 = vsel %vm467_vm4, %v1267_v20, -inf }
 0xcc5   : > { %1270 = vmax.xlane.f32.xlu0 %v1269_v21 }
 0xcd5   : > { %1154 = vrot.lane.b32.xlu1 %v1139_v3, %s2059_s16 }
 0xd51   : > { %v1274_v18 = vpop.xlane.xlu1 %1273 }
 0xd52   : > { %v1276_v22 = vsub.f32 %v1268_v16, %v1274_v18  ;;  %v1271_v24 = vpop.xlane.xlu0 %1270 }
 0xd53   : > { %v1275_v25 = vsub.f32 %v1267_v20, %v1271_v24 }
 0xd54   : > { %v1279_v29 = vmul.f32 1.442695, %v1276_v22 }
 0xd55   : > { %v1277_v26 = vmul.f32 1.442695, %v1275_v25  ;;  %v1155_v27 = vpop.permute.xlu1 %1154 }
 0xd56   : > { %2025 = vpow2.f32 %v1279_v29  ;;  %1159 = vst.msk [vmem:[#allocation3 + $0x28] sm:$0xff] %vm221_vm1, %v1155_v27 }
 0xd57   : > { %2027 = vpow2.f32 %v1277_v26 }
 0xd5d   : > { %v1296_v37 = vld [vmem:[#allocation3 + $0x28] sm:$0xff] }
 0xd60   : > { %v2026_v28 = vpop.eup %2025 }
 0xd61   : > { %v1284_v30 = vsel %vm467_vm4, %v2026_v28, 0.0  ;;  %v2028_v31 = vpop.eup %2027 }
 0xd62   : > { %1285 = vadd.xlane.f32.xlu0 %v1284_v30  ;;  %v1281_v23 = vsel %vm467_vm4, %v2028_v31, 0.0 }
 0xd66   : > { %1282 = vadd.xlane.f32.xlu0 %v1281_v23 }
 0xd7c   : > { %1152 = vrot.lane.b32.xlu0 %v1134_v5, %s2059_s16 }
 0xdef   : > { %v1286_v32 = vpop.xlane.xlu0 %1285 }
 0xdf3   : > { %v1283_v33 = vpop.xlane.xlu0 %1282 }
 0xdf4   : > { %2029 = vrcp.f32 %v1283_v33 }
 0xdf5   : > { %2031 = vrcp.f32 %v1286_v32 }
 0xdf7   : > { %v1153_v34 = vpop.permute.xlu0 %1152 }
 0xdf8   : > { %1158 = vst.msk [vmem:[#allocation3 + $0x20] sm:$0xff] %vm221_vm1, %v1153_v34 }
 0xdfe   : > { %v2030_v35 = vpop.eup %2029 }
 0xdff   : > { %v1289_v36 = vmul.f32 %v2030_v35, %v2028_v31  ;;  %v1295_v19 = vld [vmem:[#allocation3 + $0x20] sm:$0xff]  ;;  %v2032_v39 = vpop.eup %2031 }
 0xe00   : > { %v1969_v38 = vpack.c.bf16 %v1296_v37, %v1295_v19  ;;  %v1290_v40 = vmul.f32 %v2032_v39, %v2026_v28 }
 0xe01   : > { %1841 = vmatprep.mubr.msk.f32.mxu0 %vm467_vm4, %v1289_v36 }
 0xe02   : > { %1970 = vmatprep.subr.bf16.mxu0 %v1969_v38 }
 0xe03   : > { %1972 = vmatpush3.bf16.msra.mxu0 %v1969_v38 }
 0xe04   : > { %1974 = vmatprep.subr.bf16.mxu0 %v2230_v1 }
 0xe06   : > { %1842 = vmatmul.mubr.msk.f32.vlgmr.msra.gmra.mrb[14].mxu0 %vm467_vm4, %v1290_v40 }
 0xe07   : > { %1976 = vmatpush3.bf16.msra.mxu0 %v2230_v1  ;;  %v1509_v1 = vld [vmem:[%s2259_s10] sm:$0xff] (%p2115_p4) }
 0xe08   : > { %1978 = vmatprep.subr.bf16.mxu0 %v2240_v8  ;;  %1510 = vst [vmem:[%s1471_s13] sm:$0xff] (%p2115_p4), %v1509_v1 }
 0xe0b   : > { %1980 = vmatpush3.bf16.msra.mxu0 %v2240_v8  ;;  %v1511_v8 = vld [vmem:[%s2259_s10 + $0x8] sm:$0xff] (%p2115_p4) }
 0xe0c   : > { %1512 = vst [vmem:[%s1471_s13 + $0x8] sm:$0xff] (%p2115_p4), %v1511_v8 }
 0xed9   : > { %v1843_v41 = vpop.f32.mrb[14].mxu0 }
 0xeda   : > { %v1369_v42 = vpop.f32.mrb[15].mxu0 }
 0xedb   : > { %1852 = vmatprep.mubr.msk.f32.mxu0 %vm221_vm1, %v1369_v42 }
 0xedc   : > { %1853 = vmatmul.mubr.msk.f32.vlgmr.msra.gmra.mrb[16].mxu0 %vm221_vm1, %v1843_v41 }
 0xfad   : > { %1468 = sbr.rel (!%p2115_p4) target bundleno = 4028 (0xfbc), region = 44 }
 0xfaf   : > { %v1854_v43 = vpop.f32.mrb[16].mxu0 }
 0xfb0   : > { %v1456_v44 = vadd.f32 %v1854_v43, %v2255_v12  ;;  %v1450_v45 = vpop.f32.mrb[17].mxu0 }
 0xfb1   : > { %v1451_v46 = vadd.f32 %v2255_v12, %v1450_v45  ;;  %v1515_v12 = vld [vmem:[%s2259_s10 + $0x18] sm:$0xff] (%p2115_p4) }
 0xfb2   : > { %1627 = vst.msk [vmem:[%s2259_s10 + $0x28] sm:$0xff] %vm258_vm0, %v1456_v44  ;;  %1516 = vst [vmem:[%s1471_s13 + $0x28] sm:$0xff] (%p2115_p4), %v1515_v12 }
 0xfb3   : > { %1626 = vst.msk [vmem:[%s2259_s10 + $0x20] sm:$0xff] %vm258_vm0, %v1451_v46 }
 0xfb9   : > { %v1519_v49 = vld [vmem:[%s2259_s10 + $0x28] sm:$0xff] }
 0xfba   : > { %v1517_v48 = vld [vmem:[%s2259_s10 + $0x20] sm:$0xff]  ;;  %1520 = vst [vmem:[%s1471_s13 + $0x48] sm:$0xff] %v1519_v49 }
 0xfbb   : > { %1518 = vst [vmem:[%s1471_s13 + $0x40] sm:$0xff] %v1517_v48 }
 0xfbc PF: > { %p12_p8 = scmp.ge.s32.totalorder %s2105_s22, 4   ;;  %s2395_s18 = smov %s2051_s19 }
 0xfbd   : > { %s2396_s19 = smov %s2113_s25  ;;  %s2397_s20 = smov %s2105_s22 }
 0xfbe   :  { %14 = sbr.rel (!%p12_p8) target bundleno = 2 (0x2), region = 110 }

</bundles_post_ra>
